<compile_context>
chip_gen: v7x
topology: tpu7x:2x2x1
jax: 0.10.0
libtpu: 0.0.40
codegen_flags: <defaults>
</compile_context>

<pallas_src>
import functools

import jax
import jax.numpy as jnp
from jax.experimental import pallas as pl
from jax.experimental.pallas import tpu as pltpu


def _round_up(x, m):
    return (x + m - 1) // m * m


# ---------------------------------------------------------------------------
# Kernel: all decoder layers fused; the activation never leaves VMEM.
# ---------------------------------------------------------------------------
def _fused_decoder_kernel(*refs, n_layers, nu_tiles, compute_dtype):
    """refs = (u_ref, i_ref, w1_first, b1s, w2s, b2s[, w1_rest], o_ref).

    u_ref/i_ref : (TILE, d_in)         raw (unpadded-width) node-feature tiles
    w1_first    : (d_in, h_pad)        layer-0 first Linear weight
    b1s         : (L, 1, h_pad)        first biases (f32)
    w2s         : (L, h_pad, o_pad)    second Linear weights
    b2s         : (L, 1, o_pad)        second biases (f32)
    w1_rest     : (L-1, o_pad, h_pad)  first Linear weights of layers 1..L-1
    o_ref       : (TILE, o_pad)        reconstructed tile (f32)
    """
    if n_layers > 1:
        u_ref, i_ref, w1f_ref, b1_ref, w2_ref, b2_ref, w1r_ref, o_ref = refs
    else:
        u_ref, i_ref, w1f_ref, b1_ref, w2_ref, b2_ref, o_ref = refs
        w1r_ref = None

    # Grid steps [0, nu_tiles) process user tiles, the rest process item tiles.
    is_user = pl.program_id(0) < nu_tiles
    x = jnp.where(is_user, u_ref[...], i_ref[...]).astype(compute_dtype)

    # Layer 0: (TILE, d_in) @ (d_in, h_pad); bias + ReLU in f32.
    z = jnp.dot(x, w1f_ref[...], preferred_element_type=jnp.float32)
    z = jnp.maximum(z + b1_ref[0], 0.0)
    y = jnp.dot(z.astype(compute_dtype), w2_ref[0],
                preferred_element_type=jnp.float32) + b2_ref[0]

    for l in range(1, n_layers):  # static unroll; weights differ per layer
        z = jnp.dot(y.astype(compute_dtype), w1r_ref[l - 1],
                    preferred_element_type=jnp.float32)
        z = jnp.maximum(z + b1_ref[l], 0.0)
        y = jnp.dot(z.astype(compute_dtype), w2_ref[l],
                    preferred_element_type=jnp.float32) + b2_ref[l]

    o_ref[...] = y.astype(o_ref.dtype)


# ---------------------------------------------------------------------------
# One-time parameter packing (outside the per-call jit path).
# ---------------------------------------------------------------------------
def pack_reconstruction_decoder_params(params, compute_dtype=jnp.bfloat16):
    """Stack per-layer (w1, b1, w2, b2), zero-pad each dim independently, cast.

    Zero padding is exactly preserved through Linear->ReLU->Linear, so results
    are unchanged (the wrapper slices padding off).
    """
    n_layers = len(params)
    w1_0 = params[0][0]
    d_in, hidden = w1_0.shape
    d_out = params[0][2].shape[1]
    if n_layers > 1 and hidden != d_out:
        raise ValueError("Chaining decoder layers requires hidden == org feature "
                         "dim when n_layers > 1 (same constraint as the torch module).")

    h_pad = _round_up(hidden, 128)
    o_pad = _round_up(d_out, 128)

    w1_first = jnp.zeros((d_in, h_pad), compute_dtype)
    w1_first = w1_first.at[:, :hidden].set(params[0][0].astype(compute_dtype))
    b1s = jnp.zeros((n_layers, 1, h_pad), jnp.float32)
    w2s = jnp.zeros((n_layers, h_pad, o_pad), compute_dtype)
    b2s = jnp.zeros((n_layers, 1, o_pad), jnp.float32)
    w1_rest = (jnp.zeros((n_layers - 1, o_pad, h_pad), compute_dtype)
               if n_layers > 1 else None)

    for l, (w1, b1, w2, b2) in enumerate(params):
        b1s = b1s.at[l, :, :b1.shape[1]].set(b1.astype(jnp.float32))
        w2s = w2s.at[l, :w2.shape[0], :w2.shape[1]].set(w2.astype(compute_dtype))
        b2s = b2s.at[l, :, :b2.shape[1]].set(b2.astype(jnp.float32))
        if l > 0:
            w1_rest = w1_rest.at[l - 1, :w1.shape[0], :w1.shape[1]].set(
                w1.astype(compute_dtype))

    return dict(w1_first=w1_first, b1s=b1s, w2s=w2s, b2s=b2s,
                w1_rest=w1_rest, d_out=d_out)


# ---------------------------------------------------------------------------
# Forward
# ---------------------------------------------------------------------------
@functools.partial(jax.jit, static_argnames=("d_out", "tile_n"))
def _decoder_forward(ufeats, ifeats, w1_first, b1s, w2s, b2s, w1_rest, *,
                     d_out, tile_n):
    nu, d_in = ufeats.shape
    ni, d_in_i = ifeats.shape
    assert d_in_i == d_in, "ufeats/ifeats must have the same feature dim"

    n_layers = b1s.shape[0]
    h_pad = w1_first.shape[1]
    o_pad = w2s.shape[2]
    compute_dtype = w1_first.dtype

    # ---- row tiling: multiple of 8 sublanes; cap rounded to 256.  Each source
    # gets a whole number of tiles so a tile never straddles the user/item split,
    # and the grid always has >= 2 steps (megacore-friendly on v7x).
    cap = max(256, _round_up(min(tile_n, 4096), 256))
    need = _round_up(max(nu, ni), 8)
    tile = need if need < cap else cap

    nu_tiles = pl.cdiv(nu, tile)
    ni_tiles = pl.cdiv(ni, tile)
    nu_pad = nu_tiles * tile
    ni_pad = ni_tiles * tile

    def _pad_rows(x, rows):  # no-op (no copy) when already aligned
        if x.shape[0] == rows:
            return x
        return jnp.pad(x, ((0, rows - x.shape[0]), (0, 0)))

    u_in = _pad_rows(ufeats, nu_pad)
    i_in = _pad_rows(ifeats, ni_pad)

    # ---- VMEM budget (inputs/outputs double-buffered, weights resident,
    # ~4 live f32 activation slabs from the static layer unroll).
    in_bytes = jnp.dtype(ufeats.dtype).itemsize
    w_bytes = jnp.dtype(compute_dtype).itemsize
    weight_bytes = ((w1_first.size + w2s.size
                     + (w1_rest.size if w1_rest is not None else 0)) * w_bytes
                    + (b1s.size + b2s.size) * 4)
    est = (2 * 2 * tile * d_in * in_bytes
           + 2 * tile * o_pad * 4
           + 2 * weight_bytes
           + 4 * tile * max(h_pad, o_pad) * 4)
    vmem_limit = int(min(max(2 * est, 32 * 1024 * 1024), 64 * 1024 * 1024))

    kernel = functools.partial(_fused_decoder_kernel, n_layers=n_layers,
                               nu_tiles=nu_tiles, compute_dtype=compute_dtype)

    in_specs = [
        # User / item tiles: clamped index maps -> each block is DMA'd exactly
        # once over the whole grid (Pallas elides re-fetch of repeated indices).
        pl.BlockSpec((tile, d_in), lambda i: (jnp.minimum(i, nu_tiles - 1), 0)),
        pl.BlockSpec((tile, d_in), lambda i: (jnp.maximum(i - nu_tiles, 0), 0)),
        # Grid-invariant weights/biases: fetched once, kept VMEM-resident.
        pl.BlockSpec(w1_first.shape, lambda i: (0, 0)),
        pl.BlockSpec(b1s.shape, lambda i: (0, 0, 0)),
        pl.BlockSpec(w2s.shape, lambda i: (0, 0, 0)),
        pl.BlockSpec(b2s.shape, lambda i: (0, 0, 0)),
    ]
    inputs = [u_in, i_in, w1_first, b1s, w2s, b2s]
    if w1_rest is not None:
        in_specs.append(pl.BlockSpec(w1_rest.shape, lambda i: (0, 0, 0)))
        inputs.append(w1_rest)

    out = pl.pallas_call(
        kernel,
        out_shape=jax.ShapeDtypeStruct((nu_pad + ni_pad, o_pad), jnp.float32),
        grid=(nu_tiles + ni_tiles,),
        in_specs=in_specs,
        out_specs=pl.BlockSpec((tile, o_pad), lambda i: (i, 0)),
        compiler_params=pltpu.CompilerParams(
            dimension_semantics=("parallel",),   # shard node tiles on v7x megacore
            vmem_limit_bytes=vmem_limit),
    )(*inputs)

    u_out = out[:nu, :d_out]
    i_out = out[nu_pad:nu_pad + ni, :d_out]
    return u_out, i_out


def reconstruction_decoder_forward(ufeats, ifeats, packed, *, tile_n=1024):
    """JAX/Pallas equivalent of ReconstructionDecoder.forward (all layers fused)."""
    return _decoder_forward(ufeats, ifeats, packed["w1_first"], packed["b1s"],
                            packed["w2s"], packed["b2s"], packed["w1_rest"],
                            d_out=packed["d_out"], tile_n=tile_n)


# ---------------------------------------------------------------------------
# Synthetic parameter init (matches the torch module's shapes) + reference.
# ---------------------------------------------------------------------------
def init_reconstruction_decoder_params(key, n_layers, in_feats_dim,
                                       org_feats_dim, hidden_feats_dim=None):
    """W_1: (in, hidden), W_2: (hidden, org) (stored transposed vs torch's (out, in)).
    Weights Xavier-normal, biases small uniform (torch Linear default style)."""
    if hidden_feats_dim is None:
        hidden_feats_dim = org_feats_dim
    params = []
    d_in = in_feats_dim
    for _ in range(n_layers):
        key, k1, k2, k3, k4 = jax.random.split(key, 5)
        std1 = (2.0 / (d_in + hidden_feats_dim)) ** 0.5
        std2 = (2.0 / (hidden_feats_dim + org_feats_dim)) ** 0.5
        w1 = jax.random.normal(k1, (d_in, hidden_feats_dim), jnp.float32) * std1
        b1 = jax.random.uniform(k2, (1, hidden_feats_dim), jnp.float32,
                                -1.0 / d_in ** 0.5, 1.0 / d_in ** 0.5)
        w2 = jax.random.normal(k3, (hidden_feats_dim, org_feats_dim),
                               jnp.float32) * std2
        b2 = jax.random.uniform(k4, (1, org_feats_dim), jnp.float32,
                                -1.0 / hidden_feats_dim ** 0.5,
                                1.0 / hidden_feats_dim ** 0.5)
        params.append((w1, b1, w2, b2))
        d_in = hidden_feats_dim
    return params


def _reference_forward(ufeats, ifeats, params):
    """Plain-JAX full-precision reference (ReLU activation)."""
    feats = jnp.concatenate([ufeats, ifeats], axis=0)
    for (w1, b1, w2, b2) in params:
        h = jnp.dot(feats, w1, precision=jax.lax.Precision.HIGHEST) + b1
        h = jnp.maximum(h, 0.0)
        feats = jnp.dot(h, w2, precision=jax.lax.Precision.HIGHEST) + b2
    n_users = ufeats.shape[0]
    return feats[:n_users, :], feats[n_users:, :]


if __name__ == "__main__":
    key = jax.random.PRNGKey(0)
    k_u, k_i, k_p, k_u2, k_i2, k_p2 = jax.random.split(key, 6)

    # ------------------ case 1: 2-layer decoder (module default) -------------
    n_layers = 2
    n_users, n_items = 8, 8
    in_feats_dim = 32     # encoder output dim
    org_feats_dim = 16    # encoder input dim (reconstruction target); hidden = org

    ufeats = jax.random.normal(k_u, (n_users, in_feats_dim), jnp.float32)
    ifeats = jax.random.normal(k_i, (n_items, in_feats_dim), jnp.float32)
    params = init_reconstruction_decoder_params(
        k_p, n_layers, in_feats_dim, org_feats_dim, hidden_feats_dim=None)
    u_ref, i_ref = _reference_forward(ufeats, ifeats, params)

    # f32 path (exact)
    packed_f32 = pack_reconstruction_decoder_params(params, jnp.float32)
    u_out, i_out = reconstruction_decoder_forward(ufeats, ifeats, packed_f32)
    jax.block_until_ready((u_out, i_out))
    assert u_out.shape == (n_users, org_feats_dim)
    assert i_out.shape == (n_items, org_feats_dim)
    assert jnp.allclose(u_out, u_ref, atol=1e-4, rtol=1e-4)
    assert jnp.allclose(i_out, i_ref, atol=1e-4, rtol=1e-4)

    # bf16 default path (MXU-native on v5e/v6e/v7x); f32 accumulation; loose check
    packed_bf16 = pack_reconstruction_decoder_params(params)  # bf16 default
    u_bf, i_bf = reconstruction_decoder_forward(ufeats, ifeats, packed_bf16)
    jax.block_until_ready((u_bf, i_bf))
    assert bool(jnp.all(jnp.isfinite(u_bf))) and bool(jnp.all(jnp.isfinite(i_bf)))
    assert float(jnp.max(jnp.abs(u_bf - u_ref))) < 0.25
    assert float(jnp.max(jnp.abs(i_bf - i_ref))) < 0.25

    # ------------------ case 2: 1-layer decoder, ragged rows, hidden != org ---
    n_users2, n_items2 = 10, 7
    in2, hid2, org2 = 24, 20, 16
    ufeats2 = jax.random.normal(k_u2, (n_users2, in2), jnp.float32)
    ifeats2 = jax.random.normal(k_i2, (n_items2, in2), jnp.float32)
    params2 = init_reconstruction_decoder_params(k_p2, 1, in2, org2,
                                                 hidden_feats_dim=hid2)
    u_ref2, i_ref2 = _reference_forward(ufeats2, ifeats2, params2)
    packed2 = pack_reconstruction_decoder_params(params2, jnp.float32)
    u_out2, i_out2 = reconstruction_decoder_forward(ufeats2, ifeats2, packed2)
    jax.block_until_ready((u_out2, i_out2))
    assert u_out2.shape == (n_users2, org2) and i_out2.shape == (n_items2, org2)
    assert jnp.allclose(u_out2, u_ref2, atol=1e-4, rtol=1e-4)
    assert jnp.allclose(i_out2, i_ref2, atol=1e-4, rtol=1e-4)

    print("KERNEL_OK")
</pallas_src>

<mosaic_0001>
module attributes {stable_mosaic.version = 11 : i64} {
  func.func @_fused_decoder_kernel(%arg0: i32, %arg1: memref<8x32xf32, #tpu.memory_space<vmem>>, %arg2: memref<8x32xf32, #tpu.memory_space<vmem>>, %arg3: memref<32x128xf32, #tpu.memory_space<vmem>>, %arg4: memref<2x1x128xf32, #tpu.memory_space<vmem>>, %arg5: memref<2x128x128xf32, #tpu.memory_space<vmem>>, %arg6: memref<2x1x128xf32, #tpu.memory_space<vmem>>, %arg7: memref<1x128x128xf32, #tpu.memory_space<vmem>>, %arg8: memref<8x128xf32, #tpu.memory_space<vmem>>) attributes {dimension_semantics = [#tpu.dimension_semantics<parallel>], iteration_bounds = array<i64: 2>, scalar_prefetch = 0 : i64, scratch_operands = 0 : i64, tpu.core_type = #tpu.core_type<tc>, window_params = [{transform_indices = @transform_0, window_bounds = array<i64: 8, 32>}, {transform_indices = @transform_1, window_bounds = array<i64: 8, 32>}, {pipeline_mode = #tpu.pipeline_mode<synchronous>, transform_indices = @transform_2, window_bounds = array<i64: 32, 128>}, {pipeline_mode = #tpu.pipeline_mode<synchronous>, transform_indices = @transform_3, window_bounds = array<i64: 2, 1, 128>}, {pipeline_mode = #tpu.pipeline_mode<synchronous>, transform_indices = @transform_4, window_bounds = array<i64: 2, 128, 128>}, {pipeline_mode = #tpu.pipeline_mode<synchronous>, transform_indices = @transform_5, window_bounds = array<i64: 2, 1, 128>}, {pipeline_mode = #tpu.pipeline_mode<synchronous>, transform_indices = @transform_6, window_bounds = array<i64: 1, 128, 128>}, {transform_indices = @transform_7, window_bounds = array<i64: 8, 128>}]} {
    %c1_i32 = arith.constant 1 : i32
    %0 = arith.cmpi slt, %arg0, %c1_i32 : i32
    %c0 = arith.constant 0 : index
    %c0_0 = arith.constant 0 : index
    %1 = vector.load %arg1[%c0, %c0_0] : memref<8x32xf32, #tpu.memory_space<vmem>>, vector<8x32xf32>
    %c0_1 = arith.constant 0 : index
    %c0_2 = arith.constant 0 : index
    %2 = vector.load %arg2[%c0_1, %c0_2] : memref<8x32xf32, #tpu.memory_space<vmem>>, vector<8x32xf32>
    %3 = arith.select %0, %1, %2 : vector<8x32xf32>
    %c0_3 = arith.constant 0 : index
    %c0_4 = arith.constant 0 : index
    %4 = vector.load %arg3[%c0_3, %c0_4] : memref<32x128xf32, #tpu.memory_space<vmem>>, vector<32x128xf32>
    %cst = arith.constant dense<0.000000e+00> : vector<8x128xf32>
    %5 = tpu.matmul %3, %4, %cst {dimension_numbers = #tpu.dot_dimension_numbers<[1], [0], [0], [1], [0, 0, 1, 1], [], []>} : vector<8x32xf32>, vector<32x128xf32>, vector<8x128xf32> -> vector<8x128xf32>
    %c0_5 = arith.constant 0 : index
    %c0_6 = arith.constant 0 : index
    %c0_7 = arith.constant 0 : index
    %6 = vector.load %arg4[%c0_5, %c0_6, %c0_7] : memref<2x1x128xf32, #tpu.memory_space<vmem>>, vector<1x1x128xf32>
    %7 = vector.shape_cast %6 : vector<1x1x128xf32> to vector<1x128xf32>
    %8 = vector.broadcast %7 : vector<1x128xf32> to vector<8x128xf32>
    %9 = arith.addf %5, %8 : vector<8x128xf32>
    %cst_8 = arith.constant 0.000000e+00 : f32
    %10 = vector.broadcast %cst_8 : f32 to vector<8x128xf32>
    %11 = arith.maximumf %9, %10 : vector<8x128xf32>
    %c0_9 = arith.constant 0 : index
    %c0_10 = arith.constant 0 : index
    %c0_11 = arith.constant 0 : index
    %12 = vector.load %arg5[%c0_9, %c0_10, %c0_11] : memref<2x128x128xf32, #tpu.memory_space<vmem>>, vector<1x128x128xf32>
    %13 = vector.shape_cast %12 : vector<1x128x128xf32> to vector<128x128xf32>
    %cst_12 = arith.constant dense<0.000000e+00> : vector<8x128xf32>
    %14 = tpu.matmul %11, %13, %cst_12 {dimension_numbers = #tpu.dot_dimension_numbers<[1], [0], [0], [1], [0, 0, 1, 1], [], []>} : vector<8x128xf32>, vector<128x128xf32>, vector<8x128xf32> -> vector<8x128xf32>
    %c0_13 = arith.constant 0 : index
    %c0_14 = arith.constant 0 : index
    %c0_15 = arith.constant 0 : index
    %15 = vector.load %arg6[%c0_13, %c0_14, %c0_15] : memref<2x1x128xf32, #tpu.memory_space<vmem>>, vector<1x1x128xf32>
    %16 = vector.shape_cast %15 : vector<1x1x128xf32> to vector<1x128xf32>
    %17 = vector.broadcast %16 : vector<1x128xf32> to vector<8x128xf32>
    %18 = arith.addf %14, %17 : vector<8x128xf32>
    %c0_16 = arith.constant 0 : index
    %c0_17 = arith.constant 0 : index
    %c0_18 = arith.constant 0 : index
    %19 = vector.load %arg7[%c0_16, %c0_17, %c0_18] : memref<1x128x128xf32, #tpu.memory_space<vmem>>, vector<1x128x128xf32>
    %20 = vector.shape_cast %19 : vector<1x128x128xf32> to vector<128x128xf32>
    %cst_19 = arith.constant dense<0.000000e+00> : vector<8x128xf32>
    %21 = tpu.matmul %18, %20, %cst_19 {dimension_numbers = #tpu.dot_dimension_numbers<[1], [0], [0], [1], [0, 0, 1, 1], [], []>} : vector<8x128xf32>, vector<128x128xf32>, vector<8x128xf32> -> vector<8x128xf32>
    %c1 = arith.constant 1 : index
    %c0_20 = arith.constant 0 : index
    %c0_21 = arith.constant 0 : index
    %22 = vector.load %arg4[%c1, %c0_20, %c0_21] : memref<2x1x128xf32, #tpu.memory_space<vmem>>, vector<1x1x128xf32>
    %23 = vector.shape_cast %22 : vector<1x1x128xf32> to vector<1x128xf32>
    %24 = vector.broadcast %23 : vector<1x128xf32> to vector<8x128xf32>
    %25 = arith.addf %21, %24 : vector<8x128xf32>
    %cst_22 = arith.constant 0.000000e+00 : f32
    %26 = vector.broadcast %cst_22 : f32 to vector<8x128xf32>
    %27 = arith.maximumf %25, %26 : vector<8x128xf32>
    %c1_23 = arith.constant 1 : index
    %c0_24 = arith.constant 0 : index
    %c0_25 = arith.constant 0 : index
    %28 = vector.load %arg5[%c1_23, %c0_24, %c0_25] : memref<2x128x128xf32, #tpu.memory_space<vmem>>, vector<1x128x128xf32>
    %29 = vector.shape_cast %28 : vector<1x128x128xf32> to vector<128x128xf32>
    %cst_26 = arith.constant dense<0.000000e+00> : vector<8x128xf32>
    %30 = tpu.matmul %27, %29, %cst_26 {dimension_numbers = #tpu.dot_dimension_numbers<[1], [0], [0], [1], [0, 0, 1, 1], [], []>} : vector<8x128xf32>, vector<128x128xf32>, vector<8x128xf32> -> vector<8x128xf32>
    %c1_27 = arith.constant 1 : index
    %c0_28 = arith.constant 0 : index
    %c0_29 = arith.constant 0 : index
    %31 = vector.load %arg6[%c1_27, %c0_28, %c0_29] : memref<2x1x128xf32, #tpu.memory_space<vmem>>, vector<1x1x128xf32>
    %32 = vector.shape_cast %31 : vector<1x1x128xf32> to vector<1x128xf32>
    %33 = vector.broadcast %32 : vector<1x128xf32> to vector<8x128xf32>
    %34 = arith.addf %30, %33 : vector<8x128xf32>
    %c0_30 = arith.constant 0 : index
    %c0_31 = arith.constant 0 : index
    %35 = vector.load %arg8[%c0_30, %c0_31] : memref<8x128xf32, #tpu.memory_space<vmem>>, vector<8x128xf32>
    tpu.vector_store %arg8[%c0_30, %c0_31], %34 {strides = array<i32>} : memref<8x128xf32, #tpu.memory_space<vmem>>, vector<8x128xf32>,
    return
  }
  func.func @transform_0(%arg0: i32) -> (i32, i32) {
    %c0_i32 = arith.constant 0 : i32
    %0 = arith.minsi %arg0, %c0_i32 : i32
    %c0_i32_0 = arith.constant 0 : i32
    %c0_i32_1 = arith.constant 0 : i32
    return %0, %c0_i32_0 : i32, i32
  }
  func.func @transform_1(%arg0: i32) -> (i32, i32) {
    %c1_i32 = arith.constant 1 : i32
    %0 = arith.subi %arg0, %c1_i32 : i32
    %c0_i32 = arith.constant 0 : i32
    %1 = arith.maxsi %0, %c0_i32 : i32
    %c0_i32_0 = arith.constant 0 : i32
    %c0_i32_1 = arith.constant 0 : i32
    return %1, %c0_i32_0 : i32, i32
  }
  func.func @transform_2(%arg0: i32) -> (i32, i32) {
    %c0_i32 = arith.constant 0 : i32
    %c0_i32_0 = arith.constant 0 : i32
    %c0_i32_1 = arith.constant 0 : i32
    return %c0_i32, %c0_i32_0 : i32, i32
  }
  func.func @transform_3(%arg0: i32) -> (i32, i32, i32) {
    %c0_i32 = arith.constant 0 : i32
    %c0_i32_0 = arith.constant 0 : i32
    %c0_i32_1 = arith.constant 0 : i32
    %c0_i32_2 = arith.constant 0 : i32
    return %c0_i32, %c0_i32_0, %c0_i32_1 : i32, i32, i32
  }
  func.func @transform_4(%arg0: i32) -> (i32, i32, i32) {
    %c0_i32 = arith.constant 0 : i32
    %c0_i32_0 = arith.constant 0 : i32
    %c0_i32_1 = arith.constant 0 : i32
    %c0_i32_2 = arith.constant 0 : i32
    return %c0_i32, %c0_i32_0, %c0_i32_1 : i32, i32, i32
  }
  func.func @transform_5(%arg0: i32) -> (i32, i32, i32) {
    %c0_i32 = arith.constant 0 : i32
    %c0_i32_0 = arith.constant 0 : i32
    %c0_i32_1 = arith.constant 0 : i32
    %c0_i32_2 = arith.constant 0 : i32
    return %c0_i32, %c0_i32_0, %c0_i32_1 : i32, i32, i32
  }
  func.func @transform_6(%arg0: i32) -> (i32, i32, i32) {
    %c0_i32 = arith.constant 0 : i32
    %c0_i32_0 = arith.constant 0 : i32
    %c0_i32_1 = arith.constant 0 : i32
    %c0_i32_2 = arith.constant 0 : i32
    return %c0_i32, %c0_i32_0, %c0_i32_1 : i32, i32, i32
  }
  func.func @transform_7(%arg0: i32) -> (i32, i32) {
    %c0_i32 = arith.constant 0 : i32
    %c0_i32_0 = arith.constant 0 : i32
    return %arg0, %c0_i32 : i32, i32
  }
}

</mosaic_0001>

<bundles_post_ra>
// kernel: _decoder_forward.1
= control target key start
LH: loop header
LB: loop body
LE: loop exit
PB: predicated region body
PF: predicated region fallthrough
CT: control target
= control target key end

     0   :  { %s1910_s0 = inlined_call_operand.hbm [shape: f32[8,32], index: 0, kind: input, shape index: {}]   ;;  %s1911_s1 = inlined_call_operand.hbm [shape: f32[8,32], index: 1, kind: input, shape index: {}]   ;;  %s1912_s2 = inlined_call_operand.hbm [shape: f32[32,128], index: 2, kind: input, shape index: {}]   ;;  %s1913_s3 = inlined_call_operand.vmem [shape: f32[2,1,128], index: 3, kind: input, shape index: {}]   ;;  %s1914_s4 = inlined_call_operand.hbm [shape: f32[2,128,128], index: 4, kind: input, shape index: {}]   ;;  %s1915_s5 = inlined_call_operand.vmem [shape: f32[2,1,128], index: 5, kind: input, shape index: {}]   ;;  %s1916_s6 = inlined_call_operand.hbm [shape: f32[1,128,128], index: 6, kind: input, shape index: {}]   ;;  %s1917_s7 = inlined_call_operand.vmem [shape: f32[16,128], index: 7, kind: output, shape index: {}]  }
   0x1   :  { %1924 = sst [smem:[#allocation14_spill]] %s1915_s5 }
   0x2   :  { %1925 = sst [smem:[#allocation15_spill]] %s1917_s7 }
   0x3   :  { %12 = vsyncpa [#allocation3], 0 }
   0x4   :  { %14 = vsyncpa [#allocation3 + $0x1], 0 }
   0x5   :  { %15 = vsyncpa [#allocation5], 0 }
   0x6   :  { %17 = vsyncpa [#allocation5 + $0x1], 0 }
   0x7   :  { %18 = vsyncpa [#allocation8], 0  ;;  %s1536_s24 = smov 0   ;;  %s1538_s25 = smov 0  }
   0x8   :  { %s1540_s26 = smov 0   ;;  %s1542_s27 = smov 0  }
   0x9   :  { %s1544_s28 = smov 0   ;;  %s1546_s29 = smov 0  }
   0xa   :  { %s1548_s30 = smov 0  }
   0xb LB: > { %s1486_s8 = smov [#allocation6]   ;;  %s1572_s10 = sadd.s32 4294967295, %s1484_s30   ;;  %s1484_s30 = sphi %s1548_s30, %s1950_s30   ;;  %s1480_s29 = sphi %s1546_s29, %s1949_s29   ;;  %s1476_s28 = sphi %s1544_s28, %s1948_s28   ;;  %s1472_s27 = sphi %s1542_s27, %s1947_s27   ;;  %s1468_s26 = sphi %s1540_s26, %s1946_s26   ;;  %s1464_s25 = sphi %s1538_s25, %s1945_s25   ;;  %s1460_s24 = sphi %s1536_s24, %s1944_s24  }
   0xc   : > { %s234_s9 = sshll.u32 %s1486_s8, 4  ;;  %p890_p0 = scmp.ge.s32.totalorder %s1484_s30, 1  ;;  %s1577_s9 = int_to_ptr.vmem [resolvable:$true] %s234_s9 }
   0xd   : > { %p1920_p1 = scmp.eq.s32.totalorder %s1572_s10, 0  ;;  %p222_p2 = scmp.lt.s32.totalorder %s1484_s30, 3 }
   0xe   : > { %s1487_s12 = smov [#allocation7]   ;;  %s1488_s15 = smov [#allocation9]  }
   0xf   : > { %p1579_p3 = pnand %p890_p0, %p222_p2  ;;  %s250_s13 = sshll.u32 %s1487_s12, 4  ;;  %s1591_s13 = int_to_ptr.vmem [resolvable:$true] %s250_s13 }
  0x10   : > { %s266_s16 = sshll.u32 %s1488_s15, 4  ;;  %s1270_s19 = scalar_lea.hbm %s1912_s2, 512  ;;  %s1593_s16 = int_to_ptr.vmem [resolvable:$true] %s266_s16 }
  0x11   : > { %p1182_p4 = pneg %p1579_p3  ;;  %p1271_p6 = scmp.ne.s32.totalorder %s1912_s2, %s1270_s19 }
  0x12   : > { %p1277_p10 = scmp.lt.u32.totalorder %s1270_s19, %s1912_s2 }
  0x13   : > { %p1587_p5 = pnand %p1182_p4, %p1920_p1 }
  0x15   : > { %p1603_p7 = pneg %p1587_p5 }
  0x17   : > { %p1273_p8 = pnand %p1603_p7, %p1271_p6 }
  0x19   : > { %p1274_p9 = pneg %p1273_p8 }
  0x1b   : > { %p1279_p11 = pnand %p1277_p10, %p1274_p9 }
  0x1d   : > { %1282 = shalt.err (!%p1279_p11)
}
  0x1e   : > { %s1283_s12 = scalar_lea.vmem %s1577_s9, 512  ;;  %p1291_p2 = scmp.lt.s32.totalorder %s1577_s9, %s1577_s9 }
  0x1f   : > { %p1284_p12 = scmp.ne.s32.totalorder %s1577_s9, %s1283_s12  ;;  %p1292_p4 = scmp.lt.s32.totalorder %s1283_s12, %s1283_s12 }
  0x21   : > { %p1286_p13 = pnand %p1284_p12, %p1603_p7  ;;  %p1293_p6 = por %p1292_p4, %p1291_p2 }
  0x23   : > { %p1287_p0 = pneg %p1286_p13 }
  0x25   : > { %p1294_p8 = pnand %p1293_p6, %p1287_p0 }
  0x27   : > { %1297 = shalt.err (!%p1294_p8)
}
  0x28   : > { %s1489_s15 = smov 128   ;;  %s1490_s17 = smov 8  }
  0x29   : > { %1185 = dma.hbm_to_vmem [thread:$0]  (!%p1587_p5), %s1912_s2, 512, %s1577_s9, [#allocation5], %s1489_s15, %s1489_s15, %s1490_s17  }
  0x2a   : > { %s1298_s23 = scalar_lea.hbm %s1914_s4, 4096 }
  0x2b   : > { %p1299_p9 = scmp.ne.s32.totalorder %s1914_s4, %s1298_s23  ;;  %p1305_p12 = scmp.lt.u32.totalorder %s1298_s23, %s1914_s4 }
  0x2d   : > { %p1301_p10 = pnand %p1299_p9, %p1603_p7 }
  0x2f   : > { %p1302_p11 = pneg %p1301_p10 }
  0x31   : > { %p1307_p13 = pnand %p1305_p12, %p1302_p11 }
  0x33   : > { %1310 = shalt.err (!%p1307_p13)
}
  0x34   : > { %s1311_s9 = scalar_lea.vmem %s1591_s13, 4096  ;;  %p1319_p6 = scmp.lt.s32.totalorder %s1591_s13, %s1591_s13 }
  0x35   : > { %p1312_p0 = scmp.ne.s32.totalorder %s1591_s13, %s1311_s9  ;;  %p1320_p8 = scmp.lt.s32.totalorder %s1311_s9, %s1311_s9 }
  0x37   : > { %p1314_p2 = pnand %p1312_p0, %p1603_p7  ;;  %p1321_p9 = por %p1320_p8, %p1319_p6 }
  0x39   : > { %p1315_p4 = pneg %p1314_p2 }
  0x3b   : > { %p1322_p10 = pnand %p1321_p9, %p1315_p4 }
  0x3d   : > { %1325 = shalt.err (!%p1322_p10)
}
  0x3e   : > { %1188 = dma.hbm_to_vmem [thread:$0]  (!%p1587_p5), %s1914_s4, 4096, %s1591_s13, [#allocation8], %s1489_s15, %s1489_s15, %s1490_s17  }
  0x3f   : > { %s1326_s20 = scalar_lea.hbm %s1916_s6, 2048 }
  0x40   : > { %p1327_p11 = scmp.ne.s32.totalorder %s1916_s6, %s1326_s20  ;;  %p1333_p0 = scmp.lt.u32.totalorder %s1326_s20, %s1916_s6 }
  0x42   : > { %p1329_p12 = pnand %p1327_p11, %p1603_p7 }
  0x44   : > { %p1330_p13 = pneg %p1329_p12 }
  0x46   : > { %p1335_p2 = pnand %p1333_p0, %p1330_p13 }
  0x48   : > { %1338 = shalt.err (!%p1335_p2)
}
  0x49   : > { %s1339_s13 = scalar_lea.vmem %s1593_s16, 2048  ;;  %p1347_p9 = scmp.lt.s32.totalorder %s1593_s16, %s1593_s16 }
  0x4a   : > { %p1340_p4 = scmp.ne.s32.totalorder %s1593_s16, %s1339_s13  ;;  %p1348_p10 = scmp.lt.s32.totalorder %s1339_s13, %s1339_s13 }
  0x4c   : > { %p1342_p6 = pnand %p1340_p4, %p1603_p7  ;;  %p1349_p11 = por %p1348_p10, %p1347_p9 }
  0x4e   : > { %p1343_p8 = pneg %p1342_p6 }
  0x50   : > { %p1350_p12 = pnand %p1349_p11, %p1343_p8 }
  0x52   : > { %1353 = shalt.err (!%p1350_p12)
}
  0x53   : > { %1191 = dma.hbm_to_vmem [thread:$0]  (!%p1587_p5), %s1916_s6, 2048, %s1593_s16, [#allocation8], %s1489_s15, %s1489_s15, %s1490_s17  }
  0x54   : > { %s1680_s14 = sadd.s32 1, %s1484_s30   ;;  %p28_p7 = scmp.lt.s32.totalorder %s1484_s30, 0 }
  0x55   : > { %p30_p13 = scmp.lt.s32.totalorder %s1680_s14, 0  ;;  %s35_s22 = sadd.s32 1, %s1480_s29 }
  0x56   : > { %p42_p0 = scmp.ne.s32.totalorder %s1480_s29, %s1476_s28  ;;  %p1921_p2 = scmp.eq.s32.totalorder %s1484_s30, 0 }
  0x57   : > { %s29_s7 = scalar_select %p28_p7, %s1484_s30, 0 }
  0x58   : > { %s31_s18 = scalar_select %p30_p13, %s1680_s14, 0 }
  0x59   : > { %p48_p4 = scmp.ne.s32.totalorder %s1476_s28, %s1472_s27  ;;  %p1919_p6 = scmp.lt.s32.totalorder %s1484_s30, 2 }
  0x5a   : > { %s32_s19 = ssub.s32 %s29_s7, %s31_s18  ;;  %p44_p9 = por %p1921_p2, %p42_p0 }
  0x5b   : > { %p33_p8 = scmp.eq.s32.totalorder %s32_s19, 0  ;;  %p1697_p5 = por %p1920_p1, %p48_p4 }
  0x5c   : > { %s280_s15 = sand.u32 1, %s1480_s29   ;;  %s896_s21 = sshll.u32 %s29_s7, 7 }
  0x5d   : > { %s1929_s16 = scalar_select %p1697_p5, 1, 0 }
  0x5e   : > { %s1703_s17 = scalar_select %p33_p8, %s1480_s29, %s35_s22  }
  0x5f   : > { %s895_s20 = sshll.u32 %s280_s15, 3  ;;  %s1708_s12 = scalar_lea.hbm %s1910_s0, %s896_s21 }
  0x60   : > { %s284_s27 = scalar_lea.vmem [#allocation2], %s895_s20  ;;  %p1714_p10 = pnand %p1919_p6, %p44_p9 }
  0x61   : > { %s293_s13 = sshll.u32 %s284_s27, 4  ;;  %s281_s5 = scalar_lea.sflag [#allocation3], %s280_s15  ;;  %s1710_s13 = int_to_ptr.vmem [resolvable:$true] %s293_s13 }
  0x62   : > { %s1354_s22 = scalar_lea.hbm %s1708_s12, 128  ;;  %p1356_p12 = pneg %p1714_p10 }
  0x63   : > { %p1355_p11 = scmp.ne.s32.totalorder %s1708_s12, %s1354_s22  ;;  %s1359_s19 = scalar_lea.hbm %s1910_s0, 128 }
  0x64   : > { %p1360_p0 = scmp.lt.u32.totalorder %s1708_s12, %s1910_s0  ;;  %p1361_p4 = scmp.lt.u32.totalorder %s1359_s19, %s1354_s22 }
  0x65   : > { %p1357_p7 = pnand %p1356_p12, %p1355_p11  ;;  %p1363_p9 = scmp.lt.u32.totalorder %s1354_s22, %s1708_s12 }
  0x66   : > { %p1362_p8 = por %p1361_p4, %p1360_p0 }
  0x67   : > { %p1358_p13 = pneg %p1357_p7 }
  0x68   : > { %p1364_p6 = por %p1363_p9, %p1362_p8 }
  0x6a   : > { %p1365_p1 = pnand %p1364_p6, %p1358_p13 }
  0x6c   : > { %1368 = shalt.err (!%p1365_p1)
}
  0x6d   : > { %s1369_s15 = scalar_lea.vmem %s1710_s13, 128  ;;  %s1491_s23 = smov [#allocation2]  }
  0x6e   : > { %p1370_p11 = scmp.ne.s32.totalorder %s1710_s13, %s1369_s15  ;;  %s1374_s8 = sshll.u32 %s1491_s23, 4  ;;  %s1375_s8 = int_to_ptr.vmem [resolvable:$false] %s1374_s8 }
  0x6f   : > { %s1376_s27 = scalar_lea.vmem %s1375_s8, 256  ;;  %p1377_p5 = scmp.lt.s32.totalorder %s1710_s13, %s1375_s8 }
  0x70   : > { %p1372_p7 = pnand %p1370_p11, %p1356_p12  ;;  %p1378_p0 = scmp.lt.s32.totalorder %s1376_s27, %s1369_s15 }
  0x72   : > { %p1373_p2 = pneg %p1372_p7  ;;  %p1379_p4 = por %p1378_p0, %p1377_p5 }
  0x74   : > { %p1380_p8 = pnand %p1379_p4, %p1373_p2 }
  0x76   : > { %1383 = shalt.err (!%p1380_p8)
}
  0x77   : > { %1195 = dma.hbm_to_vmem [thread:$0]  (!%p1714_p10), %s1708_s12, 128, %s1710_s13, %s281_s5  }
  0x78   : > { %p59_p1 = scmp.gt.s32.totalorder %s1572_s10, 0  ;;  %s889_s22 = sadd.s32 4294967295, %s1680_s14 }
  0x79   : > { %s67_s7 = sadd.s32 1, %s1468_s26  ;;  %p62_p2 = scmp.gt.s32.totalorder %s889_s22, 0 }
  0x7a   : > { %s60_s9 = scalar_select %p59_p1, %s1572_s10, 0 }
  0x7b   : > { %p74_p6 = scmp.ne.s32.totalorder %s1468_s26, %s1464_s25  ;;  %p80_p5 = scmp.ne.s32.totalorder %s1464_s25, %s1460_s24 }
  0x7c   : > { %s300_s18 = sand.u32 1, %s1484_s30   ;;  %s1952_s22 = smov (!%p62_p2, %s889_s22), 0 }
  0x7d   : > { %p1931_p12 = scmp.eq.s32.totalorder %s1484_s30, 0  ;;  %p1932_p9 = scmp.eq.s32.totalorder %s1572_s10, 0 }
  0x7e   : > { %s64_s20 = ssub.s32 %s60_s9, %s1952_s22  ;;  %s302_s12 = sand.u32 1, %s1468_s26  }
  0x7f   : > { %p76_p13 = por %p74_p6, %p1931_p12  ;;  %p1756_p11 = por %p80_p5, %p1932_p9 }
  0x80   : > { %p65_p10 = scmp.eq.s32.totalorder %s64_s20, 0  ;;  %s897_s13 = sshll.u32 %s302_s12, 3 }
  0x81   : > { %s1933_s19 = scalar_select %p1756_p11, 1, 0 }
  0x82   : > { %s899_s5 = sshll.u32 %s60_s9, 7  ;;  %s304_s8 = scalar_lea.vmem [#allocation4], %s897_s13 }
  0x83   : > { %s1762_s21 = scalar_select %p65_p10, %s1468_s26, %s67_s7  }
  0x84   : > { %s1767_s24 = scalar_lea.hbm %s1911_s1, %s899_s5  ;;  %s314_s27 = sshll.u32 %s304_s8, 4  ;;  %s1775_s27 = int_to_ptr.vmem [resolvable:$true] %s314_s27 }
  0x85   : > { %p1934_p7 = scmp.lt.s32.totalorder %s1484_s30, 2  ;;  %s301_s7 = scalar_lea.sflag [#allocation5], %s300_s18 }
  0x86   : > { %s1384_s9 = scalar_lea.hbm %s1767_s24, 128  ;;  %s1389_s30 = scalar_lea.hbm %s1911_s1, 128 }
  0x87   : > { %p1771_p0 = pnand %p1934_p7, %p76_p13  ;;  %p1385_p4 = scmp.ne.s32.totalorder %s1767_s24, %s1384_s9 }
  0x88   : > { %p1390_p6 = scmp.lt.u32.totalorder %s1767_s24, %s1911_s1  ;;  %p1391_p5 = scmp.lt.u32.totalorder %s1389_s30, %s1384_s9 }
  0x89   : > { %p1386_p8 = pneg %p1771_p0  ;;  %p1393_p13 = scmp.lt.u32.totalorder %s1384_s9, %s1767_s24 }
  0x8a   : > { %p1392_p12 = por %p1391_p5, %p1390_p6 }
  0x8b   : > { %p1387_p1 = pnand %p1386_p8, %p1385_p4 }
  0x8c   : > { %p1394_p9 = por %p1393_p13, %p1392_p12 }
  0x8d   : > { %p1388_p2 = pneg %p1387_p1 }
  0x8f   : > { %p1395_p10 = pnand %p1394_p9, %p1388_p2 }
  0x91   : > { %1398 = shalt.err (!%p1395_p10)
}
  0x92   : > { %s1399_s18 = scalar_lea.vmem %s1775_s27, 128  ;;  %s1492_s15 = smov [#allocation4]  }
  0x93   : > { %p1400_p7 = scmp.ne.s32.totalorder %s1775_s27, %s1399_s18  ;;  %s1404_s23 = sshll.u32 %s1492_s15, 4  ;;  %s1405_s23 = int_to_ptr.vmem [resolvable:$false] %s1404_s23 }
  0x94   : > { %s1406_s8 = scalar_lea.vmem %s1405_s23, 256  ;;  %p1407_p11 = scmp.lt.s32.totalorder %s1775_s27, %s1405_s23 }
  0x95   : > { %p1402_p4 = pnand %p1400_p7, %p1386_p8  ;;  %p1408_p6 = scmp.lt.s32.totalorder %s1406_s8, %s1399_s18 }
  0x97   : > { %p1403_p1 = pneg %p1402_p4  ;;  %p1409_p5 = por %p1408_p6, %p1407_p11 }
  0x99   : > { %p1410_p12 = pnand %p1409_p5, %p1403_p1 }
  0x9b   : > { %1413 = shalt.err (!%p1410_p12)
}
  0x9c   : > { %1198 = dma.hbm_to_vmem [thread:$0]  (!%p1771_p0), %s1767_s24, 128, %s1775_s27, %s301_s7  }
  0x9d   : > { %323 = sbr.rel (%p1579_p3) target bundleno = 1049 (0x419), region = 48  ;;  %s325_s9 = sand.u32 (!%p1579_p3), 1, %s1476_s28  }
  0x9e   : > { %s1805_s20 = sshll.u32 (!%p1579_p3), %s325_s9, 3  ;;  %s326_s12 = scalar_lea.sflag (!%p1579_p3), [#allocation3], %s325_s9 }
  0x9f   : > { %s329_s30 = scalar_lea.vmem (!%p1579_p3), [#allocation2], %s1805_s20  ;;  %p1936_p8 = scmp.ne.s32.totalorder (!%p1579_p3), %s1929_s16, 0 }
  0xa4   : > { %1443 = dma.done.wait (%p1936_p8), %s326_s12, 128  }
  0xa5   : > { %1445 = vsyncadd (%p1936_p8), %s326_s12, 4294967168  ;;  %s334_s24 = sand.u32 1, %s1572_s10   ;;  %s336_s27 = sand.u32 1, %s1464_s25  }
  0xa6   : > { %s1814_s11 = sshll.u32 %s336_s27, 3  ;;  %s335_s22 = scalar_lea.sflag [#allocation5], %s334_s24 }
  0xa7   : > { %s338_s7 = scalar_lea.vmem [#allocation4], %s1814_s11  ;;  %p1937_p3 = scmp.ne.s32.totalorder %s1933_s19, 0 }
  0xa9   : > { %1447 = dma.done.wait (%p1937_p3), %s335_s22, 128  }
  0xaa   : > { %1449 = vsyncadd (%p1937_p3), %s335_s22, 4294967168  ;;  %p1938_p11 = scmp.eq.s32.totalorder %s1572_s10, 0 }
  0xac   : > { %1451 = dma.done.wait (%p1938_p11), [#allocation5], 512   ;;  %p1939_p0 = pmov %p1938_p11 }
  0xae   : > { %1453 = vsyncadd (%p1939_p0), [#allocation5], 4294966784  ;;  %p1940_p2 = pmov %p1939_p0 }
  0xaf   : > { %p1941_p13 = pmov %p1939_p0 }
  0xb0   : > { %1455 = dma.done.wait (%p1940_p2), [#allocation8], 6144  }
  0xb1   : > { %1457 = vsyncadd (%p1941_p13), [#allocation8], 4294961152  ;;  %p390_p9 = scmp.lt.s32.totalorder %s1572_s10, 1  ;;  %v1493_v0 = vmov 0.0|0.0   ;;  %vm1494_vm0 = vmmov 0   ;;  %v1495_v1 = vmov 0.0  }
  0xb2   : > { %1088 = vmatprep.subr.bf16.mxu0 %v1493_v0  ;;  %980 = vmatprep.mubr.msk.f32.mxu0 %vm1494_vm0, %v1495_v1  ;;  %v401_v2 = vld [vmem:[#allocation6] sm:$0xff]  ;;  %v402_v3 = vld [vmem:[#allocation6 + $0x8] sm:$0xff]  ;;  %v403_v4 = vld [vmem:[#allocation6 + $0x10] sm:$0xff]  ;;  %vm412_vm2 = vcmask 261120   ;;  %s1942_s15 = sld [smem:[#allocation14_spill]]  ;;  %s1943_s27 = sld [smem:[#allocation15_spill]] }
  0xb3   : > { %1094 = vmatprep.subr.bf16.mxu1 %v1493_v0  ;;  %1015 = vmatprep.mubr.msk.f32.mxu1 %vm1494_vm0, %v1495_v1  ;;  %s397_s16 = scalar_select %p390_p9, 1, 0  ;;  %v1089_v5 = vpack.c.bf16 %v402_v3, %v401_v2  ;;  %v404_v6 = vld [vmem:[#allocation6 + $0x18] sm:$0xff]  ;;  %v487_v8 = vld [vmem:[#allocation7] sm:$0xff]  ;;  %v488_v9 = vld [vmem:[#allocation7 + $0x8] sm:$0xff] }
  0xb4   : > { %v489_v10 = vld [vmem:[#allocation7 + $0x10] sm:$0xff]  ;;  %v1092_v11 = vpack.c.bf16 %v404_v6, %v403_v4  ;;  %v1095_v12 = vpack.c.bf16 %v488_v9, %v487_v8  ;;  %v490_v13 = vld [vmem:[#allocation7 + $0x18] sm:$0xff]  ;;  %v395_v14 = vld [vmem:[%s329_s30] sm:$0xff]  ;;  %s1954_s10 = smov (!%p390_p9, %s1572_s10), 1 }
  0xb5   : > { %v398_v7 = vstv %s397_s16  ;;  %1090 = vmatpush3.bf16.msra.mxu0 %v1089_v5  ;;  %v396_v15 = vld [vmem:[%s338_s7] sm:$0xff]  ;;  %v1098_v16 = vpack.c.bf16 %v490_v13, %v489_v10  ;;  %v491_v17 = vld [vmem:[#allocation7 + $0x20] sm:$0xff]  ;;  %v492_v18 = vld [vmem:[#allocation7 + $0x28] sm:$0xff]  ;;  %s906_s9 = sshll.u32 %s1954_s10, 3 }
  0xb6   : > { %1091 = vmatprep.subr.bf16.mxu0 %v1493_v0  ;;  %vm399_vm1 = vcmp.eq.s32.totalorder %v398_v7, 1  ;;  %1096 = vmatpush3.bf16.msra.mxu1 %v1095_v12  ;;  %v1101_v20 = vpack.c.bf16 %v492_v18, %v491_v17  ;;  %v493_v21 = vld [vmem:[#allocation7 + $0x30] sm:$0xff]  ;;  %v494_v22 = vld [vmem:[#allocation7 + $0x38] sm:$0xff]  ;;  %v495_v24 = vld [vmem:[#allocation7 + $0x40] sm:$0xff] }
  0xb7   : > { %1097 = vmatprep.subr.bf16.mxu1 %v1493_v0  ;;  %v400_v19 = vsel %vm399_vm1, %v395_v14, %v396_v15  ;;  %v1104_v23 = vpack.c.bf16 %v494_v22, %v493_v21  ;;  %v496_v25 = vld [vmem:[#allocation7 + $0x48] sm:$0xff]  ;;  %v497_v27 = vld [vmem:[#allocation7 + $0x50] sm:$0xff]  ;;  %v498_v28 = vld [vmem:[#allocation7 + $0x58] sm:$0xff] }
  0xb8   : > { %v1107_v26 = vpack.c.bf16 %v496_v25, %v495_v24  ;;  %v1110_v29 = vpack.c.bf16 %v498_v28, %v497_v27  ;;  %v499_v30 = vld [vmem:[#allocation7 + $0x60] sm:$0xff]  ;;  %v500_v31 = vld [vmem:[#allocation7 + $0x68] sm:$0xff]  ;;  %v501_v33 = vld [vmem:[#allocation7 + $0x70] sm:$0xff]  ;;  %s393_s11 = scalar_lea.vmem %s1943_s27, %s906_s9 }
  0xb9   : > { %1093 = vmatpush3.bf16.msra.mxu0 %v1092_v11  ;;  %v1113_v32 = vpack.c.bf16 %v500_v31, %v499_v30  ;;  %v502_v34 = vld [vmem:[#allocation7 + $0x78] sm:$0xff]  ;;  %v580_v36 = vld [vmem:[#allocation9] sm:$0xff]  ;;  %v581_v37 = vld [vmem:[#allocation9 + $0x8] sm:$0xff] }
  0xba   : > { %1118 = vmatprep.subr.bf16.mxu0 %v1493_v0  ;;  %1099 = vmatpush3.bf16.msra.mxu1 %v1098_v16  ;;  %v1116_v35 = vpack.c.bf16 %v502_v34, %v501_v33  ;;  %v582_v38 = vld [vmem:[#allocation9 + $0x10] sm:$0xff]  ;;  %v1119_v39 = vpack.c.bf16 %v581_v37, %v580_v36  ;;  %v583_v40 = vld [vmem:[#allocation9 + $0x18] sm:$0xff]  ;;  %v584_v42 = vld [vmem:[#allocation9 + $0x20] sm:$0xff] }
  0xbb   : > { %1100 = vmatprep.subr.bf16.mxu1 %v1493_v0  ;;  %v1122_v41 = vpack.c.bf16 %v583_v40, %v582_v38  ;;  %v585_v43 = vld [vmem:[#allocation9 + $0x28] sm:$0xff]  ;;  %v586_v45 = vld [vmem:[#allocation9 + $0x30] sm:$0xff]  ;;  %v587_v46 = vld [vmem:[#allocation9 + $0x38] sm:$0xff] }
  0xbc   : > { %981 = vmatmul.mubr.msk.f32.vlgmr.msra.gmra.mrb[0].mxu0 %vm412_vm2, %v400_v19  ;;  %v1125_v44 = vpack.c.bf16 %v585_v43, %v584_v42  ;;  %v1128_v47 = vpack.c.bf16 %v587_v46, %v586_v45  ;;  %v588_v48 = vld [vmem:[#allocation9 + $0x40] sm:$0xff]  ;;  %v589_v49 = vld [vmem:[#allocation9 + $0x48] sm:$0xff]  ;;  %v590_v51 = vld [vmem:[#allocation9 + $0x50] sm:$0xff] }
  0xbd   : > { %1050 = vmatprep.mubr.msk.f32.mxu0 %vm1494_vm0, %v1495_v1  ;;  %1120 = vmatpush3.bf16.msra.mxu0 %v1119_v39  ;;  %v1131_v50 = vpack.c.bf16 %v589_v49, %v588_v48  ;;  %v591_v52 = vld [vmem:[#allocation9 + $0x58] sm:$0xff]  ;;  %v592_v54 = vld [vmem:[#allocation9 + $0x60] sm:$0xff]  ;;  %v593_v55 = vld [vmem:[#allocation9 + $0x68] sm:$0xff] }
  0xbe   : > { %1102 = vmatpush3.bf16.msra.mxu1 %v1101_v20  ;;  %1121 = vmatprep.subr.bf16.mxu0 %v1493_v0  ;;  %v1134_v53 = vpack.c.bf16 %v591_v52, %v590_v51  ;;  %v1137_v56 = vpack.c.bf16 %v593_v55, %v592_v54  ;;  %v907_v57 = vld [vmem:[%s1913_s3] ss:$0 sm:$0xff]  ;;  %v595_v63 = vld [vmem:[#allocation9 + $0x78] sm:$0xff]  ;;  %v676_v3 = vld [vmem:[#allocation7 + $0x80] sm:$0xff] }
  0xbf   : > { %1103 = vmatprep.subr.bf16.mxu1 %v1493_v0  ;;  %v594_v62 = vld [vmem:[#allocation9 + $0x70] sm:$0xff]  ;;  %v677_v4 = vld [vmem:[#allocation7 + $0x88] sm:$0xff]  ;;  %v679_v7 = vld [vmem:[#allocation7 + $0x98] sm:$0xff] }
  0xc0   : > { %v1140_v2 = vpack.c.bf16 %v595_v63, %v594_v62  ;;  %v678_v5 = vld [vmem:[#allocation7 + $0x90] sm:$0xff]  ;;  %v1143_v6 = vpack.c.bf16 %v677_v4, %v676_v3  ;;  %v680_v9 = vld [vmem:[#allocation7 + $0xa0] sm:$0xff]  ;;  %v681_v10 = vld [vmem:[#allocation7 + $0xa8] sm:$0xff] }
  0xc1   : > { %1123 = vmatpush3.bf16.msra.mxu0 %v1122_v41  ;;  %v1146_v8 = vpack.c.bf16 %v679_v7, %v678_v5  ;;  %v1149_v11 = vpack.c.bf16 %v681_v10, %v680_v9  ;;  %v683_v12 = vld [vmem:[#allocation7 + $0xb8] sm:$0xff]  ;;  %v684_v14 = vld [vmem:[#allocation7 + $0xc0] sm:$0xff]  ;;  %v685_v15 = vld [vmem:[#allocation7 + $0xc8] sm:$0xff] }
  0xc2   : > { %1105 = vmatpush3.bf16.msra.mxu1 %v1104_v23  ;;  %1124 = vmatprep.subr.bf16.mxu0 %v1493_v0  ;;  %v1155_v16 = vpack.c.bf16 %v685_v15, %v684_v14  ;;  %v686_v17 = vld [vmem:[#allocation7 + $0xd0] sm:$0xff]  ;;  %v687_v18 = vld [vmem:[#allocation7 + $0xd8] sm:$0xff]  ;;  %v688_v20 = vld [vmem:[#allocation7 + $0xe0] sm:$0xff] }
  0xc3   : > { %1106 = vmatprep.subr.bf16.mxu1 %v1493_v0  ;;  %v1158_v19 = vpack.c.bf16 %v687_v18, %v686_v17  ;;  %v689_v21 = vld [vmem:[#allocation7 + $0xe8] sm:$0xff]  ;;  %v909_v23 = vld [vmem:[%s1942_s15] ss:$0 sm:$0xff]  ;;  %v691_v28 = vld [vmem:[#allocation7 + $0xf8] sm:$0xff] }
  0xc4   : > { %v1161_v22 = vpack.c.bf16 %v689_v21, %v688_v20  ;;  %v690_v27 = vld [vmem:[#allocation7 + $0xf0] sm:$0xff] }
  0xc5   : > { %1126 = vmatpush3.bf16.msra.mxu0 %v1125_v44  ;;  %v911_v30 = vld [vmem:[%s1913_s3 + $0x1] ss:$0 sm:$0xff] }
  0xc6   : > { %1108 = vmatpush3.bf16.msra.mxu1 %v1107_v26  ;;  %1127 = vmatprep.subr.bf16.mxu0 %v1493_v0  ;;  %v913_v34 = vld [vmem:[%s1942_s15 + $0x1] ss:$0 sm:$0xff] }
  0xc7   : > { %1109 = vmatprep.subr.bf16.mxu1 %v1493_v0 }
  0xc9   : > { %1129 = vmatpush3.bf16.msra.mxu0 %v1128_v47 }
  0xca   : > { %1111 = vmatpush3.bf16.msra.mxu1 %v1110_v29  ;;  %1130 = vmatprep.subr.bf16.mxu0 %v1493_v0  ;;  %v1164_v29 = vpack.c.bf16 %v691_v28, %v690_v27 }
  0xcb   : > { %1112 = vmatprep.subr.bf16.mxu1 %v1493_v0 }
  0xcd   : > { %1132 = vmatpush3.bf16.msra.mxu0 %v1131_v50 }
  0xce   : > { %1114 = vmatpush3.bf16.msra.mxu1 %v1113_v32  ;;  %1133 = vmatprep.subr.bf16.mxu0 %v1493_v0 }
  0xcf   : > { %1115 = vmatprep.subr.bf16.mxu1 %v1493_v0 }
  0xd1   : > { %1135 = vmatpush3.bf16.msra.mxu0 %v1134_v53 }
  0xd2   : > { %1117 = vmatpush3.bf16.msra.mxu1 %v1116_v35  ;;  %1136 = vmatprep.subr.bf16.mxu0 %v1493_v0 }
  0xd3   : > { %1142 = vmatprep.subr.bf16.mxu1 %v1493_v0 }
  0xd5   : > { %1138 = vmatpush3.bf16.msra.mxu0 %v1137_v56 }
  0xd6   : > { %1139 = vmatprep.subr.bf16.mxu0 %v1493_v0 }
  0xd9   : > { %1141 = vmatpush3.bf16.msra.mxu0 %v1140_v2 }
 0x18f   : > { %v482_v58 = vpop.f32.mrb[0].mxu0 }
 0x190   : > { %v483_v59 = vadd.f32 %v907_v57, %v482_v58  ;;  %v982_v60 = vpop.f32.mrb[1].mxu0 }
 0x192   : > { %v486_v61 = vmax.f32 %v483_v59, 0.0 }
 0x194   : > { %1016 = vmatmul.mubr.f32.vlgmr.msra.gmra.mrb[0].mxu1 %v486_v61 }
 0x195   : > { %1085 = vmatprep.mubr.msk.f32.mxu1 %vm1494_vm0, %v1495_v1  ;;  %1144 = vmatpush3.bf16.msra.mxu1 %v1143_v6  ;;  %v682_v1 = vld [vmem:[#allocation7 + $0xb0] sm:$0xff] }
 0x196   : > { %1145 = vmatprep.subr.bf16.mxu1 %v1493_v0  ;;  %v1152_v13 = vpack.c.bf16 %v683_v12, %v682_v1 }
 0x199   : > { %1147 = vmatpush3.bf16.msra.mxu1 %v1146_v8 }
 0x19a   : > { %1148 = vmatprep.subr.bf16.mxu1 %v1493_v0 }
 0x19d   : > { %1150 = vmatpush3.bf16.msra.mxu1 %v1149_v11 }
 0x19e   : > { %1151 = vmatprep.subr.bf16.mxu1 %v1493_v0 }
 0x1a1   : > { %1153 = vmatpush3.bf16.msra.mxu1 %v1152_v13 }
 0x1a2   : > { %1154 = vmatprep.subr.bf16.mxu1 %v1493_v0 }
 0x1a5   : > { %1156 = vmatpush3.bf16.msra.mxu1 %v1155_v16 }
 0x1a6   : > { %1157 = vmatprep.subr.bf16.mxu1 %v1493_v0 }
 0x1a9   : > { %1159 = vmatpush3.bf16.msra.mxu1 %v1158_v19 }
 0x1aa   : > { %1160 = vmatprep.subr.bf16.mxu1 %v1493_v0 }
 0x1ad   : > { %1162 = vmatpush3.bf16.msra.mxu1 %v1161_v22 }
 0x1ae   : > { %1163 = vmatprep.subr.bf16.mxu1 %v1493_v0 }
 0x1b1   : > { %1165 = vmatpush3.bf16.msra.mxu1 %v1164_v29 }
 0x267   : > { %v576_v24 = vpop.f32.mrb[0].mxu1 }
 0x268   : > { %v577_v25 = vadd.f32 %v909_v23, %v576_v24  ;;  %v1017_v26 = vpop.f32.mrb[1].mxu1 }
 0x26a   : > { %1051 = vmatmul.mubr.f32.vlgmr.msra.gmra.mrb[2].mxu0 %v577_v25 }
 0x33d   : > { %v670_v31 = vpop.f32.mrb[2].mxu0 }
 0x33e   : > { %v671_v0 = vadd.f32 %v911_v30, %v670_v31  ;;  %v1052_v32 = vpop.f32.mrb[3].mxu0 }
 0x340   : > { %v674_v33 = vmax.f32 %v671_v0, 0.0 }
 0x342   : > { %1086 = vmatmul.mubr.f32.vlgmr.msra.gmra.mrb[2].mxu1 %v674_v33 }
 0x415   : > { %v766_v35 = vpop.f32.mrb[2].mxu1 }
 0x416   : > { %v767_v36 = vadd.f32 %v913_v34, %v766_v35  ;;  %v1087_v37 = vpop.f32.mrb[3].mxu1 }
 0x418   : > { %770 = vst [vmem:[%s393_s11] sm:$0xff] %v767_v36 }
 0x419 PF: > { %p21_p10 = scmp.ge.s32.totalorder %s1680_s14, 4   ;;  %s1944_s24 = smov %s1464_s25 }
 0x41a   : > { %s1945_s25 = smov %s1468_s26  ;;  %s1946_s26 = smov %s1762_s21 }
 0x41b   : > { %s1947_s27 = smov %s1476_s28  ;;  %s1948_s28 = smov %s1480_s29 }
 0x41c   : > { %s1949_s29 = smov %s1703_s17  ;;  %s1950_s30 = smov %s1680_s14 }
 0x41d   :  { %23 = sbr.rel (!%p21_p10) target bundleno = 11 (0xb), region = 116 }
 0x424   :  { %790 = vsyncpa [#allocation3], 1 }
 0x425   :  { %792 = vsyncpa [#allocation3 + $0x1], 1 }
 0x426   :  { %793 = vsyncpa [#allocation5], 1 }
 0x427   :  { %795 = vsyncpa [#allocation5 + $0x1], 1 }
 0x428   :  { %796 = vsyncpa [#allocation8], 1 }

</bundles_post_ra>
